<compile_context>
chip_gen: v6e
topology: v6e:2x2x1
jax: 0.10.0
libtpu: 0.0.40
codegen_flags: <defaults>
</compile_context>

<pallas_src>
import functools
import math

import jax
import jax.numpy as jnp
from jax import lax
from jax.experimental import pallas as pl
from jax.experimental.pallas import tpu as pltpu


def _mha_kernel(xq_ref, xk_ref, xv_ref, mask_ref,
                wq_ref, wk_ref, wv_ref, wo_ref,
                out_ref, attn_ref,
                *, n_heads, d_k, d_v, use_bf16_matmul, eps=1e-5):
    xq = xq_ref[0]          # (TQ, D)  -- also the residual for this q-tile
    xk = xk_ref[0]          # (S,  D)
    xv = xv_ref[0]          # (S,  D)
    mask = mask_ref[0]      # (TQ, S) int8, nonzero => masked out

    mm_dtype = jnp.bfloat16 if use_bf16_matmul else jnp.float32

    def mm(a, b):           # 2-D MXU matmul, f32 accumulation
        return jnp.dot(a.astype(mm_dtype), b.astype(mm_dtype),
                       preferred_element_type=jnp.float32)

    def bmm(eq, a, b):      # heads-batched MXU matmul, f32 accumulation
        return jnp.einsum(eq, a.astype(mm_dtype), b.astype(mm_dtype),
                          preferred_element_type=jnp.float32)

    # --- projections: lane-dense 2-D matmuls (one fat dot per input) --------
    q2 = mm(xq, wq_ref[...])                     # (TQ, H*d_k)
    k2 = mm(xk, wk_ref[...])                     # (S,  H*d_k)
    v2 = mm(xv, wv_ref[...])                     # (S,  H*d_v)

    # --- split heads once into a leading batch axis --------------------------
    q = jnp.stack([q2[:, h * d_k:(h + 1) * d_k] for h in range(n_heads)], 0)
    k = jnp.stack([k2[:, h * d_k:(h + 1) * d_k] for h in range(n_heads)], 0)
    v = jnp.stack([v2[:, h * d_v:(h + 1) * d_v] for h in range(n_heads)], 0)

    # --- heads-batched scores + masked softmax (no per-head loop, no kh.T) ---
    scale = jnp.float32(1.0 / math.sqrt(d_k))
    scores = bmm('hqd,hkd->hqk', q, k) * scale   # (H, TQ, S)
    masked = mask[None, :, :] != 0               # hoisted; broadcast over heads
    scores = jnp.where(masked, jnp.float32(-1e9), scores)

    m = jnp.max(scores, axis=-1, keepdims=True)
    e = jnp.exp(scores - m)
    denom = jnp.sum(e, axis=-1, keepdims=True)
    # EUP approximate reciprocal instead of a VPU divide (tiny numerical
    # difference vs. exact division; set approx=False for bit-level parity).
    attn = e * pl.reciprocal(denom, approx=True)

    attn_ref[0] = attn                           # single (H, TQ, S) store

    # --- context + output projection -----------------------------------------
    ctx = bmm('hqk,hkd->hqd', attn, v)           # (H, TQ, d_v)
    ctx2 = jnp.concatenate([ctx[h] for h in range(n_heads)], axis=-1)  # (TQ, H*d_v)
    proj = mm(ctx2, wo_ref[...])                 # (TQ, D)

    # --- residual + LayerNorm (fresh nn.LayerNorm: gamma=1, beta=0, eps=1e-5,
    #     biased variance) using rsqrt-multiply instead of sqrt-divide ---------
    y = proj + xq
    mean = jnp.mean(y, axis=-1, keepdims=True)
    var = jnp.mean((y - mean) ** 2, axis=-1, keepdims=True)
    out_ref[0] = (y - mean) * lax.rsqrt(var + eps)


def multi_head_attention(input_q, input_k, input_v, attn_mask,
                         w_q, w_k, w_v, w_fc, *, n_heads, d_k, d_v,
                         block_q=None, use_bf16_matmul=False):
    """input_{q,k,v}: [B, S, d_model] f32; attn_mask: [B, S, S] bool (True = masked).
    w_q/w_k: [d_model, n_heads*d_k]; w_v: [d_model, n_heads*d_v];
    w_fc: [n_heads*d_v, d_model]  (already transposed vs. torch Linear.weight)."""
    B, S, D = input_q.shape
    if block_q is None:
        block_q = S
    assert S % block_q == 0, "block_q must divide S"
    assert block_q == S or block_q % 8 == 0, "block_q must keep (8,128) tiling"
    n_q = S // block_q

    # int8 mask: 4x less DMA per grid step than int32.
    mask_i8 = attn_mask.astype(jnp.int8)

    kernel = functools.partial(_mha_kernel, n_heads=n_heads, d_k=d_k, d_v=d_v,
                               use_bf16_matmul=use_bf16_matmul)

    out_shapes = (
        jax.ShapeDtypeStruct((B, S, D), jnp.float32),
        jax.ShapeDtypeStruct((B, n_heads, S, S), jnp.float32),
    )

    xq_spec = pl.BlockSpec((1, block_q, D), lambda b, qi: (b, qi, 0))
    kv_spec = pl.BlockSpec((1, S, D), lambda b, qi: (b, 0, 0))
    mask_spec = pl.BlockSpec((1, block_q, S), lambda b, qi: (b, qi, 0))
    # Weights: constant index_map -> block stays resident across grid steps.
    wq_spec = pl.BlockSpec(w_q.shape, lambda b, qi: (0, 0))
    wk_spec = pl.BlockSpec(w_k.shape, lambda b, qi: (0, 0))
    wv_spec = pl.BlockSpec(w_v.shape, lambda b, qi: (0, 0))
    wo_spec = pl.BlockSpec(w_fc.shape, lambda b, qi: (0, 0))

    out_spec = pl.BlockSpec((1, block_q, D), lambda b, qi: (b, qi, 0))
    attn_spec = pl.BlockSpec((1, n_heads, block_q, S), lambda b, qi: (b, 0, qi, 0))

    return pl.pallas_call(
        kernel,
        out_shape=out_shapes,
        grid_spec=pltpu.PrefetchScalarGridSpec(
            num_scalar_prefetch=0,
            grid=(B, n_q),
            in_specs=[xq_spec, kv_spec, kv_spec, mask_spec,
                      wq_spec, wk_spec, wv_spec, wo_spec],
            out_specs=[out_spec, attn_spec],
        ),
        compiler_params=pltpu.CompilerParams(
            dimension_semantics=("parallel", "parallel")),
    )(input_q, input_k, input_v, mask_i8, w_q, w_k, w_v, w_fc)


def _reference(input_q, input_k, input_v, attn_mask, w_q, w_k, w_v, w_fc,
               *, n_heads, d_k, d_v):
    B, S, D = input_q.shape
    q = (input_q @ w_q).reshape(B, S, n_heads, d_k).transpose(0, 2, 1, 3)
    k = (input_k @ w_k).reshape(B, S, n_heads, d_k).transpose(0, 2, 1, 3)
    v = (input_v @ w_v).reshape(B, S, n_heads, d_v).transpose(0, 2, 1, 3)
    scores = jnp.einsum("bhqd,bhkd->bhqk", q, k) / math.sqrt(d_k)
    scores = jnp.where(attn_mask[:, None, :, :], -1e9, scores)
    attn = jax.nn.softmax(scores, axis=-1)
    ctx = jnp.einsum("bhqk,bhkd->bhqd", attn, v)
    ctx = ctx.transpose(0, 2, 1, 3).reshape(B, S, n_heads * d_v)
    out = ctx @ w_fc + input_q
    mean = out.mean(-1, keepdims=True)
    var = ((out - mean) ** 2).mean(-1, keepdims=True)
    return (out - mean) / jnp.sqrt(var + 1e-5), attn


if __name__ == "__main__":
    # Small shapes consistent with the module.
    B, S, d_model = 2, 8, 32
    n_heads, d_k, d_v = 4, 8, 8

    key = jax.random.PRNGKey(0)
    keys = jax.random.split(key, 8)

    input_q = jax.random.normal(keys[0], (B, S, d_model), dtype=jnp.float32)
    input_k = jax.random.normal(keys[1], (B, S, d_model), dtype=jnp.float32)
    input_v = jax.random.normal(keys[2], (B, S, d_model), dtype=jnp.float32)

    # Boolean attention mask (True = masked), e.g. pad-style random mask.
    attn_mask = jax.random.bernoulli(keys[3], p=0.2, shape=(B, S, S))

    # Deterministic "Linear(bias=False)" weights, stored as (in, out).
    scale = 1.0 / math.sqrt(d_model)
    w_q = jax.random.uniform(keys[4], (d_model, n_heads * d_k),
                             minval=-scale, maxval=scale, dtype=jnp.float32)
    w_k = jax.random.uniform(keys[5], (d_model, n_heads * d_k),
                             minval=-scale, maxval=scale, dtype=jnp.float32)
    w_v = jax.random.uniform(keys[6], (d_model, n_heads * d_v),
                             minval=-scale, maxval=scale, dtype=jnp.float32)
    w_fc = jax.random.uniform(keys[7], (n_heads * d_v, d_model),
                              minval=-scale, maxval=scale, dtype=jnp.float32)

    out, attn = multi_head_attention(
        input_q, input_k, input_v, attn_mask,
        w_q, w_k, w_v, w_fc, n_heads=n_heads, d_k=d_k, d_v=d_v)
    jax.block_until_ready((out, attn))

    ref_out, ref_attn = _reference(
        input_q, input_k, input_v, attn_mask,
        w_q, w_k, w_v, w_fc, n_heads=n_heads, d_k=d_k, d_v=d_v)

    assert out.shape == (B, S, d_model)
    assert attn.shape == (B, n_heads, S, S)
    # Tolerances account for the approximate (EUP) softmax reciprocal; set
    # approx=False in the kernel for exact-division parity.
    assert jnp.allclose(out, ref_out, atol=2e-3, rtol=2e-3)
    assert jnp.allclose(attn, ref_attn, atol=2e-3, rtol=2e-3)

    print("KERNEL_OK")
</pallas_src>

<mosaic_0001>
module attributes {stable_mosaic.version = 11 : i64} {
  func.func @_mha_kernel(%arg0: i32, %arg1: i32, %arg2: memref<1x8x32xf32, #tpu.memory_space<vmem>>, %arg3: memref<1x8x32xf32, #tpu.memory_space<vmem>>, %arg4: memref<1x8x32xf32, #tpu.memory_space<vmem>>, %arg5: memref<1x8x8xi8, #tpu.memory_space<vmem>>, %arg6: memref<32x32xf32, #tpu.memory_space<vmem>>, %arg7: memref<32x32xf32, #tpu.memory_space<vmem>>, %arg8: memref<32x32xf32, #tpu.memory_space<vmem>>, %arg9: memref<32x32xf32, #tpu.memory_space<vmem>>, %arg10: memref<1x8x32xf32, #tpu.memory_space<vmem>>, %arg11: memref<1x4x8x8xf32, #tpu.memory_space<vmem>>) attributes {dimension_semantics = [#tpu.dimension_semantics<parallel>, #tpu.dimension_semantics<parallel>], iteration_bounds = array<i64: 2, 1>, scalar_prefetch = 0 : i64, scratch_operands = 0 : i64, tpu.core_type = #tpu.core_type<tc>, window_params = [{transform_indices = @transform_0, window_bounds = array<i64: 1, 8, 32>}, {transform_indices = @transform_1, window_bounds = array<i64: 1, 8, 32>}, {transform_indices = @transform_2, window_bounds = array<i64: 1, 8, 32>}, {transform_indices = @transform_3, window_bounds = array<i64: 1, 8, 8>}, {pipeline_mode = #tpu.pipeline_mode<synchronous>, transform_indices = @transform_4, window_bounds = array<i64: 32, 32>}, {pipeline_mode = #tpu.pipeline_mode<synchronous>, transform_indices = @transform_5, window_bounds = array<i64: 32, 32>}, {pipeline_mode = #tpu.pipeline_mode<synchronous>, transform_indices = @transform_6, window_bounds = array<i64: 32, 32>}, {pipeline_mode = #tpu.pipeline_mode<synchronous>, transform_indices = @transform_7, window_bounds = array<i64: 32, 32>}, {transform_indices = @transform_8, window_bounds = array<i64: 1, 8, 32>}, {transform_indices = @transform_9, window_bounds = array<i64: 1, 4, 8, 8>}]} {
    %c0 = arith.constant 0 : index
    %c0_0 = arith.constant 0 : index
    %c0_1 = arith.constant 0 : index
    %0 = vector.load %arg2[%c0, %c0_0, %c0_1] : memref<1x8x32xf32, #tpu.memory_space<vmem>>, vector<1x8x32xf32>
    %1 = vector.shape_cast %0 : vector<1x8x32xf32> to vector<8x32xf32>
    %c0_2 = arith.constant 0 : index
    %c0_3 = arith.constant 0 : index
    %c0_4 = arith.constant 0 : index
    %2 = vector.load %arg3[%c0_2, %c0_3, %c0_4] : memref<1x8x32xf32, #tpu.memory_space<vmem>>, vector<1x8x32xf32>
    %3 = vector.shape_cast %2 : vector<1x8x32xf32> to vector<8x32xf32>
    %c0_5 = arith.constant 0 : index
    %c0_6 = arith.constant 0 : index
    %c0_7 = arith.constant 0 : index
    %4 = vector.load %arg4[%c0_5, %c0_6, %c0_7] : memref<1x8x32xf32, #tpu.memory_space<vmem>>, vector<1x8x32xf32>
    %5 = vector.shape_cast %4 : vector<1x8x32xf32> to vector<8x32xf32>
    %c0_8 = arith.constant 0 : index
    %c0_9 = arith.constant 0 : index
    %c0_10 = arith.constant 0 : index
    %6 = vector.load %arg5[%c0_8, %c0_9, %c0_10] : memref<1x8x8xi8, #tpu.memory_space<vmem>>, vector<1x8x8xi8>
    %7 = vector.shape_cast %6 : vector<1x8x8xi8> to vector<8x8xi8>
    %c0_11 = arith.constant 0 : index
    %c0_12 = arith.constant 0 : index
    %8 = vector.load %arg6[%c0_11, %c0_12] : memref<32x32xf32, #tpu.memory_space<vmem>>, vector<32x32xf32>
    %cst = arith.constant dense<0.000000e+00> : vector<8x32xf32>
    %9 = tpu.matmul %1, %8, %cst {dimension_numbers = #tpu.dot_dimension_numbers<[1], [0], [0], [1], [0, 0, 1, 1], [], []>} : vector<8x32xf32>, vector<32x32xf32>, vector<8x32xf32> -> vector<8x32xf32>
    %c0_13 = arith.constant 0 : index
    %c0_14 = arith.constant 0 : index
    %10 = vector.load %arg7[%c0_13, %c0_14] : memref<32x32xf32, #tpu.memory_space<vmem>>, vector<32x32xf32>
    %cst_15 = arith.constant dense<0.000000e+00> : vector<8x32xf32>
    %11 = tpu.matmul %3, %10, %cst_15 {dimension_numbers = #tpu.dot_dimension_numbers<[1], [0], [0], [1], [0, 0, 1, 1], [], []>} : vector<8x32xf32>, vector<32x32xf32>, vector<8x32xf32> -> vector<8x32xf32>
    %c0_16 = arith.constant 0 : index
    %c0_17 = arith.constant 0 : index
    %12 = vector.load %arg8[%c0_16, %c0_17] : memref<32x32xf32, #tpu.memory_space<vmem>>, vector<32x32xf32>
    %cst_18 = arith.constant dense<0.000000e+00> : vector<8x32xf32>
    %13 = tpu.matmul %5, %12, %cst_18 {dimension_numbers = #tpu.dot_dimension_numbers<[1], [0], [0], [1], [0, 0, 1, 1], [], []>} : vector<8x32xf32>, vector<32x32xf32>, vector<8x32xf32> -> vector<8x32xf32>
    %14 = vector.extract_strided_slice %9 {offsets = [0, 0], sizes = [8, 8], strides = [1, 1]} : vector<8x32xf32> to vector<8x8xf32>
    %15 = vector.extract_strided_slice %9 {offsets = [0, 8], sizes = [8, 8], strides = [1, 1]} : vector<8x32xf32> to vector<8x8xf32>
    %16 = vector.extract_strided_slice %9 {offsets = [0, 16], sizes = [8, 8], strides = [1, 1]} : vector<8x32xf32> to vector<8x8xf32>
    %17 = vector.extract_strided_slice %9 {offsets = [0, 24], sizes = [8, 8], strides = [1, 1]} : vector<8x32xf32> to vector<8x8xf32>
    %18 = vector.shape_cast %14 : vector<8x8xf32> to vector<1x8x8xf32>
    %19 = vector.shape_cast %15 : vector<8x8xf32> to vector<1x8x8xf32>
    %20 = vector.shape_cast %16 : vector<8x8xf32> to vector<1x8x8xf32>
    %21 = vector.shape_cast %17 : vector<8x8xf32> to vector<1x8x8xf32>
    %22 = tpu.concatenate %18, %19, %20, %21 in 0 : vector<1x8x8xf32>, vector<1x8x8xf32>, vector<1x8x8xf32>, vector<1x8x8xf32> -> vector<4x8x8xf32>
    %23 = vector.extract_strided_slice %11 {offsets = [0, 0], sizes = [8, 8], strides = [1, 1]} : vector<8x32xf32> to vector<8x8xf32>
    %24 = vector.extract_strided_slice %11 {offsets = [0, 8], sizes = [8, 8], strides = [1, 1]} : vector<8x32xf32> to vector<8x8xf32>
    %25 = vector.extract_strided_slice %11 {offsets = [0, 16], sizes = [8, 8], strides = [1, 1]} : vector<8x32xf32> to vector<8x8xf32>
    %26 = vector.extract_strided_slice %11 {offsets = [0, 24], sizes = [8, 8], strides = [1, 1]} : vector<8x32xf32> to vector<8x8xf32>
    %27 = vector.shape_cast %23 : vector<8x8xf32> to vector<1x8x8xf32>
    %28 = vector.shape_cast %24 : vector<8x8xf32> to vector<1x8x8xf32>
    %29 = vector.shape_cast %25 : vector<8x8xf32> to vector<1x8x8xf32>
    %30 = vector.shape_cast %26 : vector<8x8xf32> to vector<1x8x8xf32>
    %31 = tpu.concatenate %27, %28, %29, %30 in 0 : vector<1x8x8xf32>, vector<1x8x8xf32>, vector<1x8x8xf32>, vector<1x8x8xf32> -> vector<4x8x8xf32>
    %32 = vector.extract_strided_slice %13 {offsets = [0, 0], sizes = [8, 8], strides = [1, 1]} : vector<8x32xf32> to vector<8x8xf32>
    %33 = vector.extract_strided_slice %13 {offsets = [0, 8], sizes = [8, 8], strides = [1, 1]} : vector<8x32xf32> to vector<8x8xf32>
    %34 = vector.extract_strided_slice %13 {offsets = [0, 16], sizes = [8, 8], strides = [1, 1]} : vector<8x32xf32> to vector<8x8xf32>
    %35 = vector.extract_strided_slice %13 {offsets = [0, 24], sizes = [8, 8], strides = [1, 1]} : vector<8x32xf32> to vector<8x8xf32>
    %36 = vector.shape_cast %32 : vector<8x8xf32> to vector<1x8x8xf32>
    %37 = vector.shape_cast %33 : vector<8x8xf32> to vector<1x8x8xf32>
    %38 = vector.shape_cast %34 : vector<8x8xf32> to vector<1x8x8xf32>
    %39 = vector.shape_cast %35 : vector<8x8xf32> to vector<1x8x8xf32>
    %40 = tpu.concatenate %36, %37, %38, %39 in 0 : vector<1x8x8xf32>, vector<1x8x8xf32>, vector<1x8x8xf32>, vector<1x8x8xf32> -> vector<4x8x8xf32>
    "tpu.trace_start"() <{level = 10 : i32, message = "hqd,hkd->hqk"}> : () -> ()
    %cst_19 = arith.constant dense<0.000000e+00> : vector<4x8x8xf32>
    %41 = tpu.matmul %22, %31, %cst_19 {dimension_numbers = #tpu.dot_dimension_numbers<[2], [2], [1], [1], [0, 0, 0, 1, 1, 1], [0], [0]>} : vector<4x8x8xf32>, vector<4x8x8xf32>, vector<4x8x8xf32> -> vector<4x8x8xf32>
    "tpu.trace_stop"() : () -> ()
    %cst_20 = arith.constant 0.353553385 : f32
    %42 = vector.broadcast %cst_20 : f32 to vector<4x8x8xf32>
    %43 = arith.mulf %41, %42 : vector<4x8x8xf32>
    %44 = vector.shape_cast %7 : vector<8x8xi8> to vector<1x8x8xi8>
    %c0_i8 = arith.constant 0 : i8
    %45 = vector.broadcast %c0_i8 : i8 to vector<1x8x8xi8>
    %46 = arith.cmpi ne, %44, %45 : vector<1x8x8xi8>
    %cst_21 = arith.constant -1.000000e+09 : f32
    %47 = vector.shape_cast %46 : vector<1x8x8xi1> to vector<1x8x8xi1>
    %48 = vector.broadcast %47 : vector<1x8x8xi1> to vector<4x8x8xi1>
    %49 = vector.broadcast %cst_21 : f32 to vector<4x8x8xf32>
    %50 = arith.select %48, %49, %43 : vector<4x8x8xi1>, vector<4x8x8xf32>
    %cst_22 = arith.constant dense<0xFF800000> : vector<4x8xf32>
    %51 = vector.multi_reduction <maximumf>, %50, %cst_22 [2] : vector<4x8x8xf32> to vector<4x8xf32>
    %52 = vector.shape_cast %51 : vector<4x8xf32> to vector<4x8x1xf32>
    %53 = vector.broadcast %52 : vector<4x8x1xf32> to vector<4x8x8xf32>
    %54 = arith.subf %50, %53 : vector<4x8x8xf32>
    %55 = math.exp %54 : vector<4x8x8xf32>
    %cst_23 = arith.constant dense<0.000000e+00> : vector<4x8xf32>
    %56 = vector.multi_reduction <add>, %55, %cst_23 [2] : vector<4x8x8xf32> to vector<4x8xf32>
    %57 = vector.shape_cast %56 : vector<4x8xf32> to vector<4x8x1xf32>
    %58 = tpu.reciprocal %57 {approx = true} : vector<4x8x1xf32> -> vector<4x8x1xf32>
    %59 = vector.broadcast %58 : vector<4x8x1xf32> to vector<4x8x8xf32>
    %60 = arith.mulf %55, %59 : vector<4x8x8xf32>
    %c0_24 = arith.constant 0 : index
    %c0_25 = arith.constant 0 : index
    %c0_26 = arith.constant 0 : index
    %c0_27 = arith.constant 0 : index
    %61 = vector.load %arg11[%c0_24, %c0_25, %c0_26, %c0_27] : memref<1x4x8x8xf32, #tpu.memory_space<vmem>>, vector<1x4x8x8xf32>
    %62 = vector.shape_cast %61 : vector<1x4x8x8xf32> to vector<4x8x8xf32>
    %63 = vector.shape_cast %60 : vector<4x8x8xf32> to vector<1x4x8x8xf32>
    tpu.vector_store %arg11[%c0_24, %c0_25, %c0_26, %c0_27], %63 {strides = array<i32>} : memref<1x4x8x8xf32, #tpu.memory_space<vmem>>, vector<1x4x8x8xf32>,
    "tpu.trace_start"() <{level = 10 : i32, message = "hqk,hkd->hqd"}> : () -> ()
    %cst_28 = arith.constant dense<0.000000e+00> : vector<4x8x8xf32>
    %64 = tpu.matmul %60, %40, %cst_28 {dimension_numbers = #tpu.dot_dimension_numbers<[2], [1], [1], [2], [0, 0, 0, 1, 1, 2], [0], [0]>} : vector<4x8x8xf32>, vector<4x8x8xf32>, vector<4x8x8xf32> -> vector<4x8x8xf32>
    "tpu.trace_stop"() : () -> ()
    %65 = vector.extract_strided_slice %64 {offsets = [0, 0, 0], sizes = [1, 8, 8], strides = [1, 1, 1]} : vector<4x8x8xf32> to vector<1x8x8xf32>
    %66 = vector.shape_cast %65 : vector<1x8x8xf32> to vector<8x8xf32>
    %67 = vector.extract_strided_slice %64 {offsets = [1, 0, 0], sizes = [1, 8, 8], strides = [1, 1, 1]} : vector<4x8x8xf32> to vector<1x8x8xf32>
    %68 = vector.shape_cast %67 : vector<1x8x8xf32> to vector<8x8xf32>
    %69 = vector.extract_strided_slice %64 {offsets = [2, 0, 0], sizes = [1, 8, 8], strides = [1, 1, 1]} : vector<4x8x8xf32> to vector<1x8x8xf32>
    %70 = vector.shape_cast %69 : vector<1x8x8xf32> to vector<8x8xf32>
    %71 = vector.extract_strided_slice %64 {offsets = [3, 0, 0], sizes = [1, 8, 8], strides = [1, 1, 1]} : vector<4x8x8xf32> to vector<1x8x8xf32>
    %72 = vector.shape_cast %71 : vector<1x8x8xf32> to vector<8x8xf32>
    %73 = tpu.concatenate %66, %68, %70, %72 in 1 : vector<8x8xf32>, vector<8x8xf32>, vector<8x8xf32>, vector<8x8xf32> -> vector<8x32xf32>
    %c0_29 = arith.constant 0 : index
    %c0_30 = arith.constant 0 : index
    %74 = vector.load %arg9[%c0_29, %c0_30] : memref<32x32xf32, #tpu.memory_space<vmem>>, vector<32x32xf32>
    %cst_31 = arith.constant dense<0.000000e+00> : vector<8x32xf32>
    %75 = tpu.matmul %73, %74, %cst_31 {dimension_numbers = #tpu.dot_dimension_numbers<[1], [0], [0], [1], [0, 0, 1, 1], [], []>} : vector<8x32xf32>, vector<32x32xf32>, vector<8x32xf32> -> vector<8x32xf32>
    %76 = arith.addf %75, %1 : vector<8x32xf32>
    %cst_32 = arith.constant dense<0.000000e+00> : vector<8xf32>
    %77 = vector.multi_reduction <add>, %76, %cst_32 [1] : vector<8x32xf32> to vector<8xf32>
    %78 = vector.shape_cast %77 : vector<8xf32> to vector<8x1xf32>
    %cst_33 = arith.constant 3.200000e+01 : f32
    %79 = vector.broadcast %cst_33 : f32 to vector<8x1xf32>
    %80 = arith.divf %78, %79 : vector<8x1xf32>
    %81 = vector.broadcast %80 : vector<8x1xf32> to vector<8x32xf32>
    %82 = arith.subf %76, %81 : vector<8x32xf32>
    %83 = arith.mulf %82, %82 : vector<8x32xf32>
    %cst_34 = arith.constant dense<0.000000e+00> : vector<8xf32>
    %84 = vector.multi_reduction <add>, %83, %cst_34 [1] : vector<8x32xf32> to vector<8xf32>
    %85 = vector.shape_cast %84 : vector<8xf32> to vector<8x1xf32>
    %cst_35 = arith.constant 3.200000e+01 : f32
    %86 = vector.broadcast %cst_35 : f32 to vector<8x1xf32>
    %87 = arith.divf %85, %86 : vector<8x1xf32>
    %88 = vector.broadcast %80 : vector<8x1xf32> to vector<8x32xf32>
    %89 = arith.subf %76, %88 : vector<8x32xf32>
    %cst_36 = arith.constant 9.99999974E-6 : f32
    %90 = vector.broadcast %cst_36 : f32 to vector<8x1xf32>
    %91 = arith.addf %87, %90 : vector<8x1xf32>
    %92 = math.rsqrt %91 : vector<8x1xf32>
    %93 = vector.broadcast %92 : vector<8x1xf32> to vector<8x32xf32>
    %94 = arith.mulf %89, %93 : vector<8x32xf32>
    %c0_37 = arith.constant 0 : index
    %c0_38 = arith.constant 0 : index
    %c0_39 = arith.constant 0 : index
    %95 = vector.load %arg10[%c0_37, %c0_38, %c0_39] : memref<1x8x32xf32, #tpu.memory_space<vmem>>, vector<1x8x32xf32>
    %96 = vector.shape_cast %95 : vector<1x8x32xf32> to vector<8x32xf32>
    %97 = vector.shape_cast %94 : vector<8x32xf32> to vector<1x8x32xf32>
    tpu.vector_store %arg10[%c0_37, %c0_38, %c0_39], %97 {strides = array<i32>} : memref<1x8x32xf32, #tpu.memory_space<vmem>>, vector<1x8x32xf32>,
    return
  }
  func.func @transform_0(%arg0: i32, %arg1: i32) -> (i32, i32, i32) {
    %c0_i32 = arith.constant 0 : i32
    %c0_i32_0 = arith.constant 0 : i32
    return %arg0, %arg1, %c0_i32 : i32, i32, i32
  }
  func.func @transform_1(%arg0: i32, %arg1: i32) -> (i32, i32, i32) {
    %c0_i32 = arith.constant 0 : i32
    %c0_i32_0 = arith.constant 0 : i32
    %c0_i32_1 = arith.constant 0 : i32
    return %arg0, %c0_i32, %c0_i32_0 : i32, i32, i32
  }
  func.func @transform_2(%arg0: i32, %arg1: i32) -> (i32, i32, i32) {
    %c0_i32 = arith.constant 0 : i32
    %c0_i32_0 = arith.constant 0 : i32
    %c0_i32_1 = arith.constant 0 : i32
    return %arg0, %c0_i32, %c0_i32_0 : i32, i32, i32
  }
  func.func @transform_3(%arg0: i32, %arg1: i32) -> (i32, i32, i32) {
    %c0_i32 = arith.constant 0 : i32
    %c0_i32_0 = arith.constant 0 : i32
    return %arg0, %arg1, %c0_i32 : i32, i32, i32
  }
  func.func @transform_4(%arg0: i32, %arg1: i32) -> (i32, i32) {
    %c0_i32 = arith.constant 0 : i32
    %c0_i32_0 = arith.constant 0 : i32
    %c0_i32_1 = arith.constant 0 : i32
    return %c0_i32, %c0_i32_0 : i32, i32
  }
  func.func @transform_5(%arg0: i32, %arg1: i32) -> (i32, i32) {
    %c0_i32 = arith.constant 0 : i32
    %c0_i32_0 = arith.constant 0 : i32
    %c0_i32_1 = arith.constant 0 : i32
    return %c0_i32, %c0_i32_0 : i32, i32
  }
  func.func @transform_6(%arg0: i32, %arg1: i32) -> (i32, i32) {
    %c0_i32 = arith.constant 0 : i32
    %c0_i32_0 = arith.constant 0 : i32
    %c0_i32_1 = arith.constant 0 : i32
    return %c0_i32, %c0_i32_0 : i32, i32
  }
  func.func @transform_7(%arg0: i32, %arg1: i32) -> (i32, i32) {
    %c0_i32 = arith.constant 0 : i32
    %c0_i32_0 = arith.constant 0 : i32
    %c0_i32_1 = arith.constant 0 : i32
    return %c0_i32, %c0_i32_0 : i32, i32
  }
  func.func @transform_8(%arg0: i32, %arg1: i32) -> (i32, i32, i32) {
    %c0_i32 = arith.constant 0 : i32
    %c0_i32_0 = arith.constant 0 : i32
    return %arg0, %arg1, %c0_i32 : i32, i32, i32
  }
  func.func @transform_9(%arg0: i32, %arg1: i32) -> (i32, i32, i32, i32) {
    %c0_i32 = arith.constant 0 : i32
    %c0_i32_0 = arith.constant 0 : i32
    %c0_i32_1 = arith.constant 0 : i32
    return %arg0, %c0_i32, %arg1, %c0_i32_0 : i32, i32, i32, i32
  }
}

</mosaic_0001>

<bundles_post_ra>
// kernel: tpu_custom_call.1
= control target key start
LH: loop header
LB: loop body
LE: loop exit
PB: predicated region body
PF: predicated region fallthrough
CT: control target
= control target key end

     0   :  { %s2919_s0 = inlined_call_operand.hbm [shape: f32[2,8,32], index: 0, kind: input, shape index: {}]   ;;  %s2920_s1 = inlined_call_operand.hbm [shape: f32[2,8,32], index: 1, kind: input, shape index: {}]   ;;  %s2921_s2 = inlined_call_operand.hbm [shape: f32[2,8,32], index: 2, kind: input, shape index: {}]   ;;  %s2922_s3 = inlined_call_operand.vmem [shape: s8[2,8,8], index: 3, kind: input, shape index: {}]   ;;  %s2923_s4 = inlined_call_operand.hbm [shape: f32[32,32], index: 4, kind: input, shape index: {}]   ;;  %s2924_s5 = inlined_call_operand.hbm [shape: f32[32,32], index: 5, kind: input, shape index: {}]   ;;  %s2925_s6 = inlined_call_operand.hbm [shape: f32[32,32], index: 6, kind: input, shape index: {}]   ;;  %s2926_s7 = inlined_call_operand.hbm [shape: f32[32,32], index: 7, kind: input, shape index: {}]   ;;  %s2927_s8 = inlined_call_operand.hbm [shape: f32[2,8,32], index: 8, kind: output, shape index: {0}]   ;;  %s2928_s9 = inlined_call_operand.hbm [shape: f32[2,4,8,8], index: 9, kind: output, shape index: {1}]  }
   0x1   :  { %2945 = sst [smem:[#allocation29_spill]] %s2920_s1 }
   0x2   :  { %2946 = sst [smem:[#allocation30_spill]] %s2923_s4 }
   0x3   :  { %2947 = sst [smem:[#allocation31_spill]] %s2924_s5 }
   0x4   :  { %2948 = sst [smem:[#allocation32_spill]] %s2925_s6 }
   0x5   :  { %2949 = sst [smem:[#allocation33_spill]] %s2927_s8 }
   0x6   :  { %15 = vsyncpa [#allocation3], 0 }
   0x7   :  { %17 = vsyncpa [#allocation3 + $0x1], 0 }
   0x8   :  { %18 = vsyncpa [#allocation6], 0 }
   0x9   :  { %20 = vsyncpa [#allocation6 + $0x1], 0 }
   0xa   :  { %21 = vsyncpa [#allocation9], 0 }
   0xb   :  { %22 = vsyncpa [#allocation12], 0 }
   0xc   :  { %23 = vsyncpa [#allocation4], 0 }
   0xd   :  { %25 = vsyncpa [#allocation4 + $0x1], 0 }
   0xe   :  { %26 = vsyncpa [#allocation16], 0 }
   0xf   :  { %28 = vsyncpa [#allocation16 + $0x1], 0  ;;  %s2504_s30 = smov 0   ;;  %s2506_s10 = smov 0  }
  0x10   :  { %s2508_s11 = smov 0   ;;  %s2510_s12 = smov 0  }
  0x11   :  { %s2512_s13 = smov 0   ;;  %s2514_s14 = smov 0  }
  0x12 LB: > { %2950 = sst [smem:[#allocation23_spill]] %s2411_s30  ;;  %s2535_s15 = sadd.s32 4294967295, %s2431_s14   ;;  %s2431_s14 = sphi %s2514_s14, %s34_s14   ;;  %s2427_s13 = sphi %s2512_s13, %s2989_s13   ;;  %s2423_s12 = sphi %s2510_s12, %s2988_s12   ;;  %s2419_s11 = sphi %s2508_s11, %s2992_s11   ;;  %s2415_s10 = sphi %s2506_s10, %s2991_s10   ;;  %s2411_s30 = sphi %s2504_s30, %s2990_s30  }
  0x13   : > { %2951 = sst [smem:[#allocation24_spill]] %s2427_s13  ;;  %p1806_p0 = scmp.ge.s32.totalorder %s2431_s14, 1 }
  0x14   : > { %2952 = sst [smem:[#allocation25_spill]] %s2431_s14  ;;  %p2939_p1 = scmp.eq.s32.totalorder %s2535_s15, 0 }
  0x15   : > { %p299_p2 = scmp.lt.s32.totalorder %s2431_s14, 3  ;;  %s2433_s17 = smov [#allocation8]  }
  0x16   : > { %s311_s18 = sshll.u32 %s2433_s17, 4  ;;  %s2434_s20 = smov [#allocation11]   ;;  %s312_s18 = int_to_ptr.vmem [resolvable:$true] %s311_s18 }
  0x17   : > { %p2540_p3 = pnand %p1806_p0, %p299_p2  ;;  %s337_s21 = sshll.u32 %s2434_s20, 4  ;;  %s338_s21 = int_to_ptr.vmem [resolvable:$true] %s337_s21 }
  0x18   : > { %s2132_s22 = scalar_lea.vmem %s312_s18, 512  ;;  %p2140_p11 = scmp.lt.s32.totalorder %s312_s18, %s312_s18 }
  0x19   : > { %p1999_p4 = pneg %p2540_p3  ;;  %p2133_p8 = scmp.ne.s32.totalorder %s312_s18, %s2132_s22 }
  0x1a   : > { %p2141_p12 = scmp.lt.s32.totalorder %s2132_s22, %s2132_s22 }
  0x1b   : > { %p2549_p6 = pnand %p1999_p4, %p2939_p1 }
  0x1c   : > { %p2142_p13 = por %p2141_p12, %p2140_p11 }
  0x1d   : > { %p2940_p7 = pneg %p2549_p6 }
  0x1f   : > { %p2135_p9 = pnand %p2133_p8, %p2940_p7 }
  0x21   : > { %p2136_p10 = pneg %p2135_p9 }
  0x23   : > { %p2143_p0 = pnand %p2142_p13, %p2136_p10 }
  0x25   : > { %2146 = shalt.err (!%p2143_p0)
}
  0x26   : > { %s2929_s23 = smov 128   ;;  %s2931_s24 = smov 8  }
  0x27   : > { %s2955_s4 = sld [smem:[#allocation30_spill]]  ;;  %s2158_s27 = scalar_lea.vmem %s338_s21, 512 }
  0x28   : > { %p2159_p2 = scmp.ne.s32.totalorder %s338_s21, %s2158_s27  ;;  %p2166_p9 = scmp.lt.s32.totalorder %s338_s21, %s338_s21 }
  0x29   : > { %p2167_p10 = scmp.lt.s32.totalorder %s2158_s27, %s2158_s27 }
  0x2a   : > { %p2161_p4 = pnand %p2159_p2, %p2940_p7 }
  0x2b   : > { %p2168_p11 = por %p2167_p10, %p2166_p9 }
  0x2c   : > { %p2162_p8 = pneg %p2161_p4 }
  0x2d   : > { %2002 = dma.hbm_to_vmem [thread:$0]  (!%p2549_p6), %s2955_s4, 512, %s312_s18, [#allocation9], %s2929_s23, %s2929_s23, %s2931_s24  }
  0x2e   : > { %p2169_p12 = pnand %p2168_p11, %p2162_p8 }
  0x30   : > { %2172 = shalt.err (!%p2169_p12)
}
  0x31   : > { %s2956_s6 = sld [smem:[#allocation32_spill]]  ;;  %s1805_s17 = sadd.s32 4294967294, %s2431_s14  }
  0x32   : > { %s46_s18 = sadd.s32 1, %s2427_s13  ;;  %s55_s20 = sadd.s32 1, %s2419_s11 }
  0x33   : > { %p48_p13 = scmp.ge.s32.totalorder %s46_s18, 2  ;;  %p62_p0 = scmp.ne.s32.totalorder %s2419_s11, %s2415_s10 }
  0x34   : > { %p63_p2 = scmp.eq.s32.totalorder %s2431_s14, 0  ;;  %p68_p8 = scmp.ne.s32.totalorder %s2415_s10, %s2411_s30 }
  0x35   : > { %s2994_s18 = smov (%p48_p13, %s46_s18), 0  ;;  %p258_p9 = scmp.eq.s32.totalorder %s2535_s15, 1 }
  0x36   : > { %2957 = sst [smem:[#allocation26_spill]] %s2994_s18  ;;  %p2585_p4 = por %p63_p2, %p62_p0 }
  0x37   : > { %2008 = dma.hbm_to_vmem [thread:$0]  (!%p2549_p6), %s2956_s6, 512, %s338_s21, [#allocation12], %s2929_s23, %s2929_s23, %s2931_s24  }
  0x38   : > { %s50_s21 = ssub.s32 %s2427_s13, %s2994_s18  ;;  %p2596_p11 = por %p2939_p1, %p68_p8 }
  0x39   : > { %p53_p10 = scmp.eq.s32.totalorder %s50_s21, 0  ;;  %p2600_p12 = por %p258_p9, %p62_p0 }
  0x3a   : > { %p264_p13 = scmp.eq.s32.totalorder %s1805_s17, 1  ;;  %p2033_p5 = scmp.lt.s32.totalorder %s2431_s14, 2 }
  0x3b   : > { %s2960_s26 = scalar_select %p2600_p12, 1, 0 }
  0x3c   : > { %s2605_s27 = scalar_select %p53_p10, %s2419_s11, %s55_s20  }
  0x3d   : > { %p2607_p2 = por %p264_p13, %p68_p8  ;;  %s2935_s29 = sand.u32 1, %s2419_s11  }
  0x3e   : > { %2961 = sst [smem:[#allocation27_spill]] %s2605_s27  ;;  %s2614_s23 = sshll.u32 %s2427_s13, 7 }
  0x3f   : > { %s2962_s28 = scalar_select %p2607_p2, 1, 0 }
  0x40   : > { %s2618_s21 = sshll.u32 %s2935_s29, 3  ;;  %p2622_p0 = pnand %p2033_p5, %p2585_p4 }
  0x41   : > { %2963 = sst [smem:[#allocation28_spill]] %s2962_s28  ;;  %s383_s17 = sand.u32 1, %s2431_s14  }
  0x42   : > { %s2965_s1 = sld [smem:[#allocation29_spill]]  ;;  %s387_s18 = scalar_lea.vmem [#allocation5], %s2618_s21 }
  0x43   : > { %s394_s13 = sshll.u32 %s387_s18, 4  ;;  %s2632_s27 = scalar_lea.sflag [#allocation6], %s383_s17  ;;  %s395_s13 = int_to_ptr.vmem [resolvable:$true] %s394_s13 }
  0x44   : > { %p2941_p8 = pneg %p2622_p0  ;;  %s2186_s22 = scalar_lea.vmem %s395_s13, 128 }
  0x45   : > { %p2187_p9 = scmp.ne.s32.totalorder %s395_s13, %s2186_s22  ;;  %s2437_s29 = smov [#allocation5]  }
  0x46   : > { %s2191_s28 = sshll.u32 %s2437_s29, 4  ;;  %s2192_s28 = int_to_ptr.vmem [resolvable:$false] %s2191_s28 }
  0x47   : > { %p2189_p5 = pnand %p2187_p9, %p2941_p8  ;;  %s2193_s14 = scalar_lea.vmem %s2192_s28, 256 }
  0x48   : > { %s392_s6 = scalar_lea.hbm %s2965_s1, %s2614_s23  ;;  %p2194_p10 = scmp.lt.s32.totalorder %s395_s13, %s2192_s28 }
  0x49   : > { %p2190_p4 = pneg %p2189_p5  ;;  %p2195_p13 = scmp.lt.s32.totalorder %s2193_s14, %s2186_s22 }
  0x4b   : > { %p2196_p1 = por %p2195_p13, %p2194_p10 }
  0x4d   : > { %p2197_p7 = pnand %p2196_p1, %p2190_p4 }
  0x4f   : > { %2200 = shalt.err (!%p2197_p7)
}
  0x50   : > { %2018 = dma.hbm_to_vmem [thread:$0]  (!%p2622_p0), %s392_s6, 128, %s395_s13, %s2632_s27  }
  0x51   : > { %s2438_s4 = smov [#allocation10]   ;;  %s2439_s17 = smov [#allocation13]  }
  0x52   : > { %s324_s18 = sshll.u32 %s2438_s4, 4  ;;  %s350_s20 = sshll.u32 %s2439_s17, 4  ;;  %s325_s18 = int_to_ptr.vmem [resolvable:$true] %s324_s18  ;;  %s351_s20 = int_to_ptr.vmem [resolvable:$true] %s350_s20 }
  0x53   : > { %s2212_s1 = scalar_lea.vmem %s325_s18, 512  ;;  %p2966_p5 = pneg %p2549_p6 }
  0x54   : > { %p2213_p9 = scmp.ne.s32.totalorder %s325_s18, %s2212_s1  ;;  %p2220_p12 = scmp.lt.s32.totalorder %s325_s18, %s325_s18 }
  0x55   : > { %p2221_p10 = scmp.lt.s32.totalorder %s2212_s1, %s2212_s1 }
  0x56   : > { %p2215_p8 = pnand %p2213_p9, %p2966_p5 }
  0x57   : > { %p2222_p1 = por %p2221_p10, %p2220_p12 }
  0x58   : > { %p2216_p2 = pneg %p2215_p8 }
  0x5a   : > { %p2223_p7 = pnand %p2222_p1, %p2216_p2 }
  0x5c   : > { %2226 = shalt.err (!%p2223_p7)
}
  0x5d   : > { %s2967_s14 = smov 8   ;;  %s2968_s6 = smov 128  }
  0x5e   : > { %s2969_s5 = sld [smem:[#allocation31_spill]]  ;;  %s2238_s29 = scalar_lea.vmem %s351_s20, 512 }
  0x5f   : > { %p2239_p4 = scmp.ne.s32.totalorder %s351_s20, %s2238_s29  ;;  %p2970_p8 = pmov %p2966_p5 }
  0x60   : > { %p2246_p12 = scmp.lt.s32.totalorder %s351_s20, %s351_s20  ;;  %p2247_p2 = scmp.lt.s32.totalorder %s2238_s29, %s2238_s29 }
  0x61   : > { %p2241_p13 = pnand %p2239_p4, %p2970_p8 }
  0x62   : > { %p2248_p5 = por %p2247_p2, %p2246_p12 }
  0x63   : > { %p2242_p9 = pneg %p2241_p13 }
  0x64   : > { %2005 = dma.hbm_to_vmem [thread:$0]  (!%p2549_p6), %s2969_s5, 512, %s325_s18, [#allocation9], %s2968_s6, %s2968_s6, %s2967_s14  }
  0x65   : > { %p2249_p10 = pnand %p2248_p5, %p2242_p9 }
  0x67   : > { %2252 = shalt.err (!%p2249_p10)
}
  0x68   : > { %2011 = dma.hbm_to_vmem [thread:$0]  (!%p2549_p6), %s2926_s7, 512, %s351_s20, [#allocation12], %s2968_s6, %s2968_s6, %s2967_s14  }
  0x69   : > { %s374_s17 = scalar_lea.hbm %s2919_s0, %s2614_s23  ;;  %s368_s13 = scalar_lea.vmem [#allocation2], %s2618_s21 }
  0x6a   : > { %s376_s28 = sshll.u32 %s368_s13, 4  ;;  %s410_s5 = scalar_lea.hbm %s2921_s2, %s2614_s23  ;;  %s377_s28 = int_to_ptr.vmem [resolvable:$true] %s376_s28 }
  0x6b   : > { %s2971_s30 = sand.u32 1, %s2419_s11   ;;  %s2266_s1 = scalar_lea.vmem %s377_s28, 128 }
  0x6c   : > { %s365_s8 = scalar_lea.sflag [#allocation3], %s2971_s30  ;;  %p2267_p1 = scmp.ne.s32.totalorder %s377_s28, %s2266_s1 }
  0x6d   : > { %p2972_p7 = pneg %p2622_p0  ;;  %s2440_s20 = smov [#allocation2]  }
  0x6e   : > { %s2271_s14 = sshll.u32 %s2440_s20, 4  ;;  %s2272_s14 = int_to_ptr.vmem [resolvable:$false] %s2271_s14 }
  0x6f   : > { %p2269_p4 = pnand %p2267_p1, %p2972_p7  ;;  %s2273_s6 = scalar_lea.vmem %s2272_s14, 256 }
  0x70   : > { %p2274_p6 = scmp.lt.s32.totalorder %s377_s28, %s2272_s14  ;;  %p2275_p13 = scmp.lt.s32.totalorder %s2273_s6, %s2266_s1 }
  0x71   : > { %p2270_p8 = pneg %p2269_p4 }
  0x72   : > { %p2276_p9 = por %p2275_p13, %p2274_p6 }
  0x74   : > { %p2277_p12 = pnand %p2276_p9, %p2270_p8 }
  0x76   : > { %2280 = shalt.err (!%p2277_p12)
}
  0x77   : > { %2015 = dma.hbm_to_vmem [thread:$0]  (!%p2622_p0), %s374_s17, 128, %s377_s28, %s365_s8  }
  0x78   : > { %s405_s30 = scalar_lea.vmem [#allocation7], %s2618_s21  ;;  %p2973_p5 = pmov %p2972_p7 }
  0x79   : > { %s412_s22 = sshll.u32 %s405_s30, 4  ;;  %s2441_s18 = smov [#allocation7]   ;;  %s413_s22 = int_to_ptr.vmem [resolvable:$true] %s412_s22 }
  0x7a   : > { %s2294_s4 = scalar_lea.vmem %s413_s22, 128  ;;  %s2299_s13 = sshll.u32 %s2441_s18, 4  ;;  %s2300_s13 = int_to_ptr.vmem [resolvable:$false] %s2299_s13 }
  0x7b   : > { %p2295_p2 = scmp.ne.s32.totalorder %s413_s22, %s2294_s4  ;;  %s2301_s19 = scalar_lea.vmem %s2300_s13, 256 }
  0x7c   : > { %p2302_p7 = scmp.lt.s32.totalorder %s413_s22, %s2300_s13  ;;  %p2303_p4 = scmp.lt.s32.totalorder %s2301_s19, %s2294_s4 }
  0x7d   : > { %p2297_p10 = pnand %p2295_p2, %p2973_p5 }
  0x7e   : > { %p2304_p8 = por %p2303_p4, %p2302_p7 }
  0x7f   : > { %p2298_p1 = pneg %p2297_p10 }
  0x81   : > { %p2305_p6 = pnand %p2304_p8, %p2298_p1 }
  0x83   : > { %2308 = shalt.err (!%p2305_p6)
}
  0x84   : > { %2021 = dma.hbm_to_vmem [thread:$0]  (!%p2622_p0), %s410_s5, 128, %s413_s22, %s2632_s27  }
  0x85   : > { %431 = sbr.rel (%p2540_p3) target bundleno = 1809 (0x711), region = 52  ;;  %s2695_s17 = sand.u32 (!%p2540_p3), 1, %s2415_s10  }
  0x86   : > { %s2698_s28 = sshll.u32 (!%p2540_p3), %s2695_s17, 3  ;;  %s434_s24 = scalar_lea.sflag (!%p2540_p3), [#allocation3], %s2695_s17 }
  0x87   : > { %s437_s29 = scalar_lea.vmem (!%p2540_p3), [#allocation2], %s2698_s28 }
  0x8a   : > { %2386 = dma.done.wait (%p2596_p11), %s434_s24, 128  }
  0x8b   : > { %2388 = vsyncadd (%p2596_p11), %s434_s24, 4294967168  ;;  %s442_s5 = sand.u32 1, %s2535_s15   ;;  %s446_s23 = scalar_lea.vmem [#allocation5], %s2698_s28 }
  0x8c   : > { %s443_s16 = scalar_lea.sflag [#allocation6], %s442_s5 }
  0x8d   : > { %2390 = dma.done.wait (%p2596_p11), %s443_s16, 256  }
  0x8e   : > { %2392 = vsyncadd (%p2596_p11), %s443_s16, 4294967040  ;;  %s455_s27 = scalar_lea.vmem [#allocation7], %s2698_s28  ;;  %p2974_p3 = scmp.eq.s32.totalorder %s2535_s15, 0 }
  0x90   : > { %2394 = dma.done.wait (%p2974_p3), [#allocation9], 1024   ;;  %p2975_p0 = pmov %p2974_p3 }
  0x92   : > { %2396 = vsyncadd (%p2975_p0), [#allocation9], 4294966272  ;;  %p2976_p13 = pmov %p2975_p0 }
  0x93   : > { %p2977_p9 = pmov %p2975_p0 }
  0x94   : > { %2398 = dma.done.wait (%p2976_p13), [#allocation12], 1024  }
  0x95   : > { %2400 = vsyncadd (%p2977_p9), [#allocation12], 4294966272  ;;  %v2442_v0 = vmov 0.0   ;;  %vm2443_vm0 = vmmov 0   ;;  %v622_v1 = vld [vmem:[#allocation10 + $0x18] sm:$0xff]  ;;  %v621_v3 = vld [vmem:[#allocation10 + $0x10] sm:$0xff] }
  0x96   : > { %1900 = vmatprep.subr.mxu1 %v2442_v0  ;;  %1889 = vmatprep.subr.mxu0 %v2442_v0  ;;  %v544_v2 = vld [vmem:[#allocation8 + $0x18] sm:$0xff]  ;;  %v543_v4 = vld [vmem:[#allocation8 + $0x10] sm:$0xff]  ;;  %v620_v5 = vld [vmem:[#allocation10 + $0x8] sm:$0xff]  ;;  %vm545_vm1 = vcmask 261120   ;;  %vm797_vm2 = vcmask 64512   ;;  %s2444_s15 = smov 112  }
  0x97   : > { %1908 = vmatprep.mubr.msk.f32.mxu1 %vm2443_vm0, %v2442_v0  ;;  %1897 = vmatprep.mubr.msk.f32.mxu0 %vm2443_vm0, %v2442_v0  ;;  %v542_v6 = vld [vmem:[#allocation8 + $0x8] sm:$0xff]  ;;  %v619_v7 = vld [vmem:[#allocation10] sm:$0xff]  ;;  %v2735_v10 = vld [vmem:[%s437_s29] sm:$0xff]  ;;  %s2445_s25 = smov 120   ;;  %s2446_s1 = smov 104   ;;  %v2447_v27 = vmov 0  }
  0x98   : > { %1901 = vmatpush3.msra.mxu1 %v622_v1  ;;  %1890 = vmatpush3.msra.mxu0 %v544_v2  ;;  %v541_v8 = vld [vmem:[#allocation8] sm:$0xff]  ;;  %v699_v13 = vld [vmem:[#allocation11 + $0x18] sm:$0xff]  ;;  %v698_v14 = vld [vmem:[#allocation11 + $0x10] sm:$0xff]  ;;  %p528_p11 = scmp.lt.s32.totalorder %s2423_s12, 1  ;;  %s1827_s4 = sshll.u32 %s2695_s17, 5  ;;  %vm1461_vm5 = vcmask 130048  }
  0x99   : > { %1902 = vmatprep.subr.mxu1 %v2442_v0  ;;  %1891 = vmatprep.subr.mxu0 %v2442_v0  ;;  %v538_v9 = vld [vmem:[%s446_s23] sm:$0xff]  ;;  %v539_v19 = vld [vmem:[%s455_s27] sm:$0xff]  ;;  %s2814_s18 = scalar_lea.vmem [#allocation15], %s1827_s4  ;;  %s2448_s13 = smov 8   ;;  %vm1463_vm6 = vcmask 195584  }
  0x9a   : > { %1903 = vmatpush3.msra.mxu1 %v621_v3  ;;  %1892 = vmatpush3.msra.mxu0 %v543_v4  ;;  %v697_v17 = vld [vmem:[#allocation11 + $0x8] sm:$0xff]  ;;  %v696_v18 = vld [vmem:[#allocation11] sm:$0xff]  ;;  %s529_s20 = scalar_select %p528_p11, %s2423_s12, 1 }
  0x9b   : > { %1904 = vmatprep.subr.mxu1 %v2442_v0  ;;  %1893 = vmatprep.subr.mxu0 %v2442_v0  ;;  %v1465_v31 = vld [vmem:[#allocation13] sm:$0xff]  ;;  %s2449_s19 = smov 16   ;;  %s2450_s8 = smov 24  }
  0x9c   : > { %1905 = vmatpush3.msra.mxu1 %v620_v5  ;;  %1894 = vmatpush3.msra.mxu0 %v542_v6  ;;  %s1828_s14 = sshll.u32 %s529_s20, 1  ;;  %s1852_s21 = sshll.u32 %s2423_s12, 9 }
  0x9d   : > { %1906 = vmatprep.subr.mxu1 %v2442_v0  ;;  %1895 = vmatprep.subr.mxu0 %v2442_v0  ;;  %s534_s22 = scalar_lea.vmem %s2922_s3, %s1828_s14  ;;  %s1591_s24 = sshll.u32 %s2814_s18, 4  ;;  %s2851_s24 = int_to_ptr.vmem [resolvable:$true] %s1591_s24 }
  0x9e   : > { %1907 = vmatpush3.msra.mxu1 %v619_v7  ;;  %1896 = vmatpush3.msra.mxu0 %v541_v8  ;;  %v540_v26 = vld [vmem:[%s534_s22] sm:$0x3]  ;;  %s2849_s16 = scalar_lea.hbm %s2928_s9, %s1852_s21  ;;  %s1563_s23 = scalar_lea.sflag [#allocation16], %s2695_s17 }
  0x9f   : > { %1909 = vmatmul.mubr.msk.f32.vlgmr.msra.gmra.mxu1 %vm545_vm1, %v538_v9  ;;  %1898 = vmatmul.mubr.msk.f32.vlgmr.msra.gmra.mxu0 %vm545_vm1, %v2735_v10  ;;  %vm1098_vm3 = vnez %v540_v26  ;;  %s2309_s27 = scalar_lea.vmem %s2851_s24, 512  ;;  %p2980_p2 = scmp.ne.s32.totalorder %s2960_s26, 0 }
  0xa0   : > { %1922 = vmatprep.subr.mxu1 %v2442_v0  ;;  %1924 = vmatprep.mubr.msk.f32.mxu1 %vm2443_vm0, %v2442_v0  ;;  %v1099_v28 = vsel %vm1098_vm3, 16843009, %v2447_v27  ;;  %p2310_p12 = scmp.ne.s32.totalorder %s2851_s24, %s2309_s27 }
  0xa1   : > { %1911 = vmatprep.subr.mxu0 %v2442_v0  ;;  %1919 = vmatprep.mubr.msk.f32.mxu0 %vm2443_vm0, %v2442_v0  ;;  %v1100_v29 = vunpack.c.0.s8 %v1099_v28  ;;  %v1468_v28 = vld [vmem:[#allocation13 + $0x18] sm:$0xff] }
  0xa2   : > { %1912 = vmatpush3.msra.mxu0 %v699_v13  ;;  %p2311_p5 = pnand %p2310_p12, %p2980_p2 }
  0xa3   : > { %1913 = vmatprep.subr.mxu0 %v2442_v0  ;;  %vm2788_vm4 = vcmp.ne.s32.totalorder %v1100_v29, 0  ;;  %v1467_v29 = vld [vmem:[#allocation13 + $0x10] sm:$0xff] }
  0xa4   : > { %1914 = vmatpush3.msra.mxu0 %v698_v14  ;;  %p2312_p10 = pneg %p2311_p5 }
  0xa5   : > { %1915 = vmatprep.subr.mxu0 %v2442_v0 }
  0xa6   : > { %1916 = vmatpush3.msra.mxu0 %v697_v17 }
  0xa7   : > { %1917 = vmatprep.subr.mxu0 %v2442_v0 }
  0xa8   : > { %1918 = vmatpush3.msra.mxu0 %v696_v18 }
  0xa9   : > { %1920 = vmatmul.mubr.msk.f32.vlgmr.msra.gmra.mxu0 %vm545_vm1, %v539_v19  ;;  %1942 = vmatprep.subr.mxu0 %v2442_v0 }
  0xaa   : > { %1944 = vmatprep.mubr.msk.f32.mxu0 %vm2443_vm0, %v2442_v0 }
 0x15f   : > { %v692_v11 = vpop.f32.mrf.mxu1  ;;  %v615_v12 = vpop.f32.mrf.mxu0 }
 0x160   : > { %783 = vrot.lane.b32.xlu1 %v692_v11, %s2444_s15  ;;  %781 = vrot.lane.b32.xlu0 %v692_v11, %s2445_s25 }
 0x161   : > { %1923 = vmatpush3.xpose.msk.msra.mxu1 %vm797_vm2, %v692_v11  ;;  %v1910_v15 = vpop.f32.mrf.mxu1  ;;  %v1899_v16 = vpop.f32.mrf.mxu0 }
 0x162   : > { %1927 = vmatprep.subr.mxu1 %v2442_v0 }
 0x164   : > { %1925 = vmatmul.mubr.msk.f32.vlgmr.msra.gmra.mxu1 %vm797_vm2, %v615_v12  ;;  %776 = vrot.lane.b32.xlu1 %v615_v12, %s2444_s15 }
 0x165   : > { %774 = vrot.lane.b32.xlu0 %v615_v12, %s2445_s25  ;;  %1929 = vmatprep.mubr.msk.f32.mxu1 %vm2443_vm0, %v2442_v0 }
 0x168   : > { %778 = vrot.lane.b32.xlu1 %v615_v12, %s2446_s1 }
 0x169   : > { %785 = vrot.lane.b32.xlu0 %v692_v11, %s2446_s1  ;;  %v769_v36 = vpop.f32.mrf.mxu0 }
 0x16a   : > { %1943 = vmatpush3.msra.mxu0 %v769_v36 }
 0x16b   : > { %v1921_v37 = vpop.f32.mrf.mxu0  ;;  %1952 = vmatprep.subr.mxu0 %v2442_v0 }
 0x1d2   : > { %v782_v20 = vpop.permute.xlu0 %781  ;;  %v784_v21 = vpop.permute.xlu1 %783 }
 0x1d3   : > { %1928 = vmatpush3.xpose.msk.msra.mxu1 %vm797_vm2, %v782_v20 }
 0x1d4   : > { %1932 = vmatprep.subr.mxu1 %v2442_v0 }
 0x1d6   : > { %v777_v23 = vpop.permute.xlu1 %776 }
 0x1d7   : > { %v775_v22 = vpop.permute.xlu0 %774 }
 0x1d8   : > { %1930 = vmatmul.mubr.msk.f32.vlgmr.msra.gmra.mxu1 %vm797_vm2, %v775_v22 }
 0x1d9   : > { %1933 = vmatpush3.xpose.msk.msra.mxu1 %vm797_vm2, %v784_v21  ;;  %1934 = vmatprep.mubr.msk.f32.mxu1 %vm2443_vm0, %v2442_v0 }
 0x1da   : > { %1937 = vmatprep.subr.mxu1 %v2442_v0  ;;  %v779_v25 = vpop.permute.xlu1 %778 }
 0x1db   : > { %v786_v24 = vpop.permute.xlu0 %785 }
 0x1dc   : > { %1935 = vmatmul.mubr.msk.f32.vlgmr.msra.gmra.mxu1 %vm797_vm2, %v777_v23 }
 0x1dd   : > { %1938 = vmatpush3.xpose.msk.msra.mxu1 %vm797_vm2, %v786_v24  ;;  %1939 = vmatprep.mubr.msk.f32.mxu1 %vm2443_vm0, %v2442_v0 }
 0x1de   : > { %1947 = vmatprep.subr.mxu1 %v2442_v0 }
 0x1e0   : > { %1940 = vmatmul.mubr.msk.f32.vlgmr.msra.gmra.mxu1 %vm797_vm2, %v779_v25 }
 0x1e1   : > { %1949 = vmatprep.mubr.msk.f32.mxu1 %vm2443_vm0, %v2442_v0 }
 0x224   : > { %v868_v30 = vpop.f32.mrf.mxu1 }
 0x225   : > { %v1094_v32 = vmul.f32 0.35355338, %v868_v30  ;;  %v1466_v30 = vld [vmem:[#allocation13 + $0x8] sm:$0xff] }
 0x226   : > { %v1926_v33 = vpop.f32.mrf.mxu1 }
 0x227   : > { %v1104_v34 = vsel %vm2788_vm4, -1e+09, %v1094_v32 }
 0x228   : > { %v1108_v35 = vsel %vm797_vm2, %v1104_v34, -inf }
 0x229   : > { %1109 = vmax.xlane.f32.xlu0 %v1108_v35 }
 0x298   : > { %v942_v38 = vpop.f32.mrf.mxu1 }
 0x299   : > { %v1095_v39 = vmul.f32 0.35355338, %v942_v38 }
 0x29a   : > { %v1931_v40 = vpop.f32.mrf.mxu1 }
 0x29b   : > { %v1105_v41 = vsel %vm2788_vm4, -1e+09, %v1095_v39 }
 0x29c   : > { %v1016_v42 = vpop.f32.mrf.mxu1  ;;  %v1111_v43 = vsel %vm797_vm2, %v1105_v41, -inf }
 0x29d   : > { %v1096_v44 = vmul.f32 0.35355338, %v1016_v42  ;;  %1112 = vmax.xlane.f32.xlu1 %v1111_v43 }
 0x29e   : > { %v1936_v45 = vpop.f32.mrf.mxu1 }
 0x29f   : > { %v1106_v46 = vsel %vm2788_vm4, -1e+09, %v1096_v44 }
 0x2a0   : > { %v1090_v47 = vpop.f32.mrf.mxu1  ;;  %v1114_v48 = vsel %vm797_vm2, %v1106_v46, -inf }
 0x2a1   : > { %v1097_v49 = vmul.f32 0.35355338, %v1090_v47  ;;  %1115 = vmax.xlane.f32.xlu0 %v1114_v48 }
 0x2a2   : > { %v1941_v50 = vpop.f32.mrf.mxu1 }
 0x2a3   : > { %v1107_v51 = vsel %vm2788_vm4, -1e+09, %v1097_v49 }
 0x2a4   : > { %v1117_v52 = vsel %vm797_vm2, %v1107_v51, -inf }
 0x2a5   : > { %1118 = vmax.xlane.f32.xlu0 %v1117_v52 }
 0x2ae   : > { %788 = vrot.lane.b32.xlu1 %v769_v36, %s2445_s25 }
 0x2b2   : > { %v1110_v53 = vpop.xlane.xlu0 %1109 }
 0x2b3   : > { %v1120_v54 = vsub.f32 %v1104_v34, %v1110_v53 }
 0x2b5   : > { %v1124_v55 = vmul.f32 1.442695, %v1120_v54 }
 0x2b7   : > { %2103 = vpow2.f32 %v1124_v55 }
 0x2c4   : > { %v2104_v56 = vpop.eup %2103 }
 0x2c5   : > { %v1132_v57 = vsel %vm797_vm2, %v2104_v56, 0.0 }
 0x2d2   : > { %1133 = vadd.xlane.f32.xlu1 %v1132_v57 }
 0x326   : > { %v1113_v58 = vpop.xlane.xlu1 %1112 }
 0x327   : > { %v1121_v59 = vsub.f32 %v1105_v41, %v1113_v58 }
 0x329   : > { %v1126_v60 = vmul.f32 1.442695, %v1121_v59 }
 0x32a   : > { %v1116_v61 = vpop.xlane.xlu0 %1115  ;;  %v789_v62 = vpop.permute.xlu1 %788 }
 0x32b   : > { %2105 = vpow2.f32 %v1126_v60  ;;  %v1122_v63 = vsub.f32 %v1106_v46, %v1116_v61  ;;  %1948 = vmatpush3.msra.mxu1 %v789_v62 }
 0x32c   : > { %1957 = vmatprep.subr.mxu1 %v2442_v0 }
 0x32d   : > { %v1128_v1 = vmul.f32 1.442695, %v1122_v63 }
 0x32e   : > { %v1119_v2 = vpop.xlane.xlu0 %1118 }
 0x32f   : > { %2107 = vpow2.f32 %v1128_v1  ;;  %v1123_v3 = vsub.f32 %v1107_v51, %v1119_v2 }
 0x331   : > { %v1130_v4 = vmul.f32 1.442695, %v1123_v3 }
 0x333   : > { %2109 = vpow2.f32 %v1130_v4 }
 0x338   : > { %v2106_v5 = vpop.eup %2105 }
 0x339   : > { %v1135_v6 = vsel %vm797_vm2, %v2106_v5, 0.0 }
 0x33a   : > { %1136 = vadd.xlane.f32.xlu0 %v1135_v6 }
 0x33c   : > { %v2108_v7 = vpop.eup %2107 }
 0x33d   : > { %v1138_v8 = vsel %vm797_vm2, %v2108_v7, 0.0 }
 0x33e   : > { %1139 = vadd.xlane.f32.xlu1 %v1138_v8 }
 0x340   : > { %v2110_v9 = vpop.eup %2109 }
 0x341   : > { %v1141_v11 = vsel %vm797_vm2, %v2110_v9, 0.0 }
 0x342   : > { %1142 = vadd.xlane.f32.xlu0 %v1141_v11 }
 0x34f   : > { %794 = vrot.lane.b32.xlu1 %v769_v36, %s2446_s1 }
 0x358   : > { %791 = vrot.lane.b32.xlu0 %v769_v36, %s2444_s15  ;;  %s2451_s15 = smov [#allocation15]  }
 0x359   : > { %s2313_s25 = sshll.u32 %s2451_s15, 4  ;;  %s2314_s25 = int_to_ptr.vmem [resolvable:$false] %s2313_s25 }
 0x35a   : > { %s2315_s1 = scalar_lea.vmem %s2314_s25, 1024  ;;  %p2316_p1 = scmp.lt.s32.totalorder %s2851_s24, %s2314_s25 }
 0x35b   : > { %v1134_v12 = vpop.xlane.xlu1 %1133  ;;  %p2317_p7 = scmp.lt.s32.totalorder %s2315_s1, %s2309_s27 }
 0x35c   : > { %2111 = vrcp.f32 %v1134_v12 }
 0x35d   : > { %p2318_p4 = por %p2317_p7, %p2316_p1 }
 0x35f   : > { %p2319_p8 = pnand %p2318_p4, %p2312_p10 }
 0x369   : > { %v2112_v13 = vpop.eup %2111 }
 0x36a   : > { %v1148_v14 = vmul.f32 %v2112_v13, %v2104_v56 }
 0x36c   : > { %1152 = vst.msk [vmem:[%s2814_s18] sm:$0xff] %vm797_vm2, %v1148_v14  ;;  %1945 = vmatmul.mubr.msk.f32.vlgmr.msra.gmra.mxu0 %vm797_vm2, %v1148_v14 }
 0x36d   : > { %1954 = vmatprep.mubr.msk.f32.mxu0 %vm2443_vm0, %v2442_v0 }
 0x3c3   : > { %v1137_v15 = vpop.xlane.xlu0 %1136 }
 0x3c4   : > { %2113 = vrcp.f32 %v1137_v15 }
 0x3c7   : > { %v1140_v16 = vpop.xlane.xlu1 %1139 }
 0x3c8   : > { %2115 = vrcp.f32 %v1140_v16 }
 0x3cb   : > { %v1143_v17 = vpop.xlane.xlu0 %1142  ;;  %v795_v21 = vpop.permute.xlu1 %794 }
 0x3cc   : > { %2117 = vrcp.f32 %v1143_v17 }
 0x3cf   : > { %v792_v18 = vpop.permute.xlu0 %791 }
 0x3d0   : > { %1953 = vmatpush3.msra.mxu0 %v792_v18 }
 0x3d1   : > { %v2114_v19 = vpop.eup %2113  ;;  %1962 = vmatprep.subr.mxu0 %v2442_v0 }
 0x3d2   : > { %v1149_v20 = vmul.f32 %v2114_v19, %v2106_v5 }
 0x3d4   : > { %1153 = vst.msk [vmem:[%s2814_s18 + $0x8] sm:$0xff] %vm797_vm2, %v1149_v20  ;;  %1950 = vmatmul.mubr.msk.f32.vlgmr.msra.gmra.mxu1 %vm797_vm2, %v1149_v20 }
 0x3d5   : > { %v2116_v22 = vpop.eup %2115  ;;  %1958 = vmatpush3.msra.mxu1 %v795_v21  ;;  %1959 = vmatprep.mubr.msk.f32.mxu1 %vm2443_vm0, %v2442_v0 }
 0x3d6   : > { %v1150_v23 = vmul.f32 %v2116_v22, %v2108_v7 }
 0x3d8   : > { %1154 = vst.msk [vmem:[%s2814_s18 + $0x10] sm:$0xff] %vm797_vm2, %v1150_v23  ;;  %1955 = vmatmul.mubr.msk.f32.vlgmr.msra.gmra.mxu0 %vm797_vm2, %v1150_v23 }
 0x3d9   : > { %v2118_v24 = vpop.eup %2117  ;;  %1970 = vmatprep.mubr.msk.f32.mxu0 %vm2443_vm0, %v2442_v0  ;;  %1963 = vmatpush3.msra.mxu0 %v1468_v28 }
 0x3da   : > { %v1151_v25 = vmul.f32 %v2118_v24, %v2110_v9  ;;  %1964 = vmatprep.subr.mxu0 %v2442_v0 }
 0x3db   : > { %1965 = vmatpush3.msra.mxu0 %v1467_v29 }
 0x3dc   : > { %1155 = vst.msk [vmem:[%s2814_s18 + $0x18] sm:$0xff] %vm797_vm2, %v1151_v25  ;;  %1960 = vmatmul.mubr.msk.f32.vlgmr.msra.gmra.mxu1 %vm797_vm2, %v1151_v25  ;;  %1966 = vmatprep.subr.mxu0 %v2442_v0 }
 0x3dd   : > { %1967 = vmatpush3.msra.mxu0 %v1466_v30 }
 0x3de   : > { %1968 = vmatprep.subr.mxu0 %v2442_v0 }
 0x3df   : > { %1969 = vmatpush3.msra.mxu0 %v1465_v31 }
 0x42c   : > { %v1225_v26 = vpop.f32.mrf.mxu0 }
 0x42e   : > { %v1946_v27 = vpop.f32.mrf.mxu0 }
 0x494   : > { %v1298_v32 = vpop.f32.mrf.mxu1 }
 0x495   : > { %1449 = vrot.lane.b32.xlu1 %v1298_v32, %s2448_s13 }
 0x496   : > { %v1951_v33 = vpop.f32.mrf.mxu1 }
 0x498   : > { %v1371_v34 = vpop.f32.mrf.mxu0 }
 0x499   : > { %1453 = vrot.lane.b32.xlu0 %v1371_v34, %s2449_s19 }
 0x49a   : > { %v1956_v35 = vpop.f32.mrf.mxu0 }
 0x49c   : > { %v1444_v36 = vpop.f32.mrf.mxu1 }
 0x49d   : > { %1457 = vrot.lane.b32.xlu1 %v1444_v36, %s2450_s8 }
 0x49e   : > { %v1961_v37 = vpop.f32.mrf.mxu1 }
 0x507   : > { %v1450_v38 = vpop.permute.xlu1 %1449 }
 0x508   : > { %v1460_v0 = vsel %vm797_vm2, %v1225_v26, %v1450_v38 }
 0x50b   : > { %v1454_v39 = vpop.permute.xlu0 %1453 }
 0x50c   : > { %v1462_v40 = vsel %vm1461_vm5, %v1460_v0, %v1454_v39 }
 0x50f   : > { %v1458_v41 = vpop.permute.xlu1 %1457 }
 0x510   : > { %v1464_v42 = vsel %vm1463_vm6, %v1462_v40, %v1458_v41 }
 0x511   : > { %1971 = vmatmul.mubr.msk.f32.vlgmr.msra.gmra.mxu0 %vm545_vm1, %v1464_v42 }
 0x5d1   : > { %v1538_v43 = vpop.f32.mrf.mxu0 }
 0x5d2   : > { %v1539_v44 = vadd.f32 %v1538_v43, %v2735_v10 }
 0x5d3   : > { %v1972_v45 = vpop.f32.mrf.mxu0 }
 0x5d4   : > { %v1542_v46 = vsel %vm545_vm1, %v1539_v44, 0.0 }
 0x5d5   : > { %1543 = vadd.xlane.f32.xlu0 %v1542_v46 }
 0x65e   : > { %v1544_v47 = vpop.xlane.xlu0 %1543 }
 0x65f   : > { %v1546_v48 = vmul.f32 0.03125, %v1544_v47 }
 0x661   : > { %v1547_v49 = vsub.f32 %v1539_v44, %v1546_v48 }
 0x663   : > { %v1548_v50 = vmul.f32 %v1547_v49, %v1547_v49 }
 0x665   : > { %v1549_v51 = vsel %vm545_vm1, %v1548_v50, 0.0 }
 0x666   : > { %1550 = vadd.xlane.f32.xlu1 %v1549_v51 }
 0x667   : > { %2322 = shalt.err (!%p2319_p8)
}
 0x668   : > { %s2323_s20 = scalar_lea.hbm %s2849_s16, 512  ;;  %s2327_s30 = scalar_lea.hbm %s2928_s9, 1024 }
 0x669   : > { %p2324_p6 = scmp.ne.s32.totalorder %s2849_s16, %s2323_s20  ;;  %p2328_p13 = scmp.lt.s32.totalorder %s2849_s16, %s2928_s9 }
 0x66a   : > { %p2329_p9 = scmp.lt.s32.totalorder %s2327_s30, %s2323_s20 }
 0x66b   : > { %p2325_p3 = pnand %p2324_p6, %p2980_p2 }
 0x66c   : > { %p2330_p11 = por %p2329_p9, %p2328_p13 }
 0x66d   : > { %p2326_p0 = pneg %p2325_p3 }
 0x66f   : > { %p2331_p12 = pnand %p2330_p11, %p2326_p0 }
 0x671   : > { %2334 = shalt.err (!%p2331_p12)
}
 0x672   : > { %s2452_s18 = smov 128   ;;  %s1847_s19 = sshll.u32 %s2423_s12, 7 }
 0x673   : > { %1996 = dma.vmem_to_hbm [thread:$0]  (%p2980_p2), %s2851_s24, 512, %s2849_s16, %s1563_s23, %s2452_s18, %s2452_s18, %s2448_s13  }
 0x674   : > { %s520_s8 = scalar_lea.vmem [#allocation14], %s2698_s28  ;;  %s2981_s27 = sld [smem:[#allocation33_spill]] }
 0x675   : > { %s1577_s21 = sshll.u32 %s520_s8, 4  ;;  %s1558_s25 = scalar_lea.sflag [#allocation4], %s2695_s17  ;;  %s1578_s21 = int_to_ptr.vmem [resolvable:$true] %s1577_s21 }
 0x676   : > { %s2335_s1 = scalar_lea.vmem %s1578_s21, 128  ;;  %s2453_s13 = smov [#allocation14]  }
 0x677   : > { %p2336_p5 = scmp.ne.s32.totalorder %s1578_s21, %s2335_s1  ;;  %s2339_s24 = sshll.u32 %s2453_s13, 4  ;;  %s2340_s24 = int_to_ptr.vmem [resolvable:$false] %s2339_s24 }
 0x678   : > { %s2341_s12 = scalar_lea.vmem %s2340_s24, 256  ;;  %p2342_p7 = scmp.lt.s32.totalorder %s1578_s21, %s2340_s24 }
 0x679   : > { %p2337_p10 = pnand %p2336_p5, %p2980_p2  ;;  %p2343_p4 = scmp.lt.s32.totalorder %s2341_s12, %s2335_s1 }
 0x67a   : > { %s1575_s15 = scalar_lea.hbm %s2981_s27, %s1847_s19 }
 0x67b   : > { %p2338_p1 = pneg %p2337_p10  ;;  %p2344_p8 = por %p2343_p4, %p2342_p7 }
 0x67d   : > { %p2345_p6 = pnand %p2344_p8, %p2338_p1 }
 0x6ef   : > { %v1551_v10 = vpop.xlane.xlu1 %1550 }
 0x6f0   : > { %v1552_v52 = vmul.f32 0.03125, %v1551_v10 }
 0x6f2   : > { %v1553_v53 = vadd.f32 1e-05, %v1552_v52 }
 0x6f4   : > { %2119 = vrsqrt.f32 %v1553_v53 }
 0x701   : > { %v2120_v54 = vpop.eup %2119 }
 0x702   : > { %v1555_v55 = vmul.f32 %v2120_v54, %v1547_v49 }
 0x704   : > { %1556 = vst.msk [vmem:[%s520_s8] sm:$0xff] %vm545_vm1, %v1555_v55 }
 0x705   : > { %2348 = shalt.err (!%p2345_p6)
}
 0x706   : > { %s2349_s28 = scalar_lea.hbm %s1575_s15, 128  ;;  %s2353_s23 = scalar_lea.hbm %s2981_s27, 256 }
 0x707   : > { %p2350_p3 = scmp.ne.s32.totalorder %s1575_s15, %s2349_s28  ;;  %p2354_p9 = scmp.lt.s32.totalorder %s1575_s15, %s2981_s27 }
 0x708   : > { %p2355_p11 = scmp.lt.s32.totalorder %s2353_s23, %s2349_s28 }
 0x709   : > { %p2351_p0 = pnand %p2350_p3, %p2980_p2 }
 0x70a   : > { %p2356_p12 = por %p2355_p11, %p2354_p9 }
 0x70b   : > { %p2352_p13 = pneg %p2351_p0 }
 0x70d   : > { %p2357_p5 = pnand %p2356_p12, %p2352_p13 }
 0x70f   : > { %2360 = shalt.err (!%p2357_p5)
}
 0x710   : > { %1995 = dma.vmem_to_hbm [thread:$0]  (%p2980_p2), %s1578_s21, 128, %s1575_s15, %s1558_s25  }
 0x711 PF: > { %s2982_s6 = sld [smem:[#allocation23_spill]] }
 0x712   : > { %s2983_s30 = sld [smem:[#allocation28_spill]] }
 0x713   : > { %s2984_s22 = sld [smem:[#allocation25_spill]] }
 0x717   : > { %s1606_s4 = sand.u32 1, %s2982_s6  }
 0x718   : > { %p2985_p10 = scmp.ne.s32.totalorder %s2983_s30, 0  ;;  %s1607_s18 = scalar_lea.sflag [#allocation4], %s1606_s4 }
 0x719   : > { %p2986_p1 = scmp.ge.s32.totalorder %s2984_s22, 2 }
 0x71b   : > { %p2023_p7 = pnand %p2986_p1, %p2985_p10 }
 0x71d   : > { %p2024_p4 = pneg %p2023_p7 }
 0x71f   : > { %2402 = dma.done.wait (%p2024_p4), %s1607_s18, 128  }
 0x720   : > { %2404 = vsyncadd (%p2024_p4), %s1607_s18, 4294967168  ;;  %s1616_s19 = scalar_lea.sflag [#allocation16], %s1606_s4 }
 0x721   : > { %2406 = dma.done.wait (%p2024_p4), %s1616_s19, 512  }
 0x722   : > { %2408 = vsyncadd (%p2024_p4), %s1616_s19, 4294966784  ;;  %s34_s14 = sadd.s32 1, %s2984_s22   ;;  %s2987_s26 = sld [smem:[#allocation27_spill]] }
 0x723   : > { %p31_p8 = scmp.ge.s32.totalorder %s34_s14, 4   ;;  %s2988_s12 = sld [smem:[#allocation24_spill]] }
 0x724   : > { %s2989_s13 = sld [smem:[#allocation26_spill]]  ;;  %s2990_s30 = smov %s2415_s10 }
 0x725   : > { %s2991_s10 = smov %s2419_s11  ;;  %33 = sbr.rel (!%p31_p8) target bundleno = 18 (0x12), region = 157 }
 0x728   : > { %s2992_s11 = smov %s2987_s26 }
 0x72a   :  { %1621 = vsyncpa [#allocation3], 1 }
 0x72b   :  { %1623 = vsyncpa [#allocation3 + $0x1], 1 }
 0x72c   :  { %1624 = vsyncpa [#allocation6], 1 }
 0x72d   :  { %1626 = vsyncpa [#allocation6 + $0x1], 1 }
 0x72e   :  { %1627 = vsyncpa [#allocation9], 1 }
 0x72f   :  { %1628 = vsyncpa [#allocation12], 1 }
 0x730   :  { %1629 = vsyncpa [#allocation4], 1 }
 0x731   :  { %1631 = vsyncpa [#allocation4 + $0x1], 1 }
 0x732   :  { %1632 = vsyncpa [#allocation16], 1 }
 0x733   :  { %1634 = vsyncpa [#allocation16 + $0x1], 1 }

</bundles_post_ra>
